<compile_context>
chip_gen: v7x
topology: tpu7x:2x2x1
jax: 0.10.0
libtpu: 0.0.40
codegen_flags: <defaults>
</compile_context>

<pallas_src>
import functools

import jax
import jax.numpy as jnp
from jax import lax
from jax.experimental import pallas as pl
from jax.experimental.pallas import tpu as pltpu


DROPOUT_P = 0.1   # nn.Dropout(dropout) in training mode
_LANE = 128


def make_positional_encoding(max_len: int, num_hiddens: int) -> jnp.ndarray:
    """Same construction as the PyTorch module's self.P (without the leading 1)."""
    pos = jnp.arange(max_len, dtype=jnp.float32)[:, None]                   # (max_len, 1)
    div = jnp.power(
        10000.0,
        jnp.arange(0, num_hiddens, 2, dtype=jnp.float32) / num_hiddens,     # (H/2,)
    )
    X = pos / div                                                           # (max_len, H/2)
    P = jnp.zeros((max_len, num_hiddens), dtype=jnp.float32)
    P = P.at[:, 0::2].set(jnp.sin(X))
    P = P.at[:, 1::2].set(jnp.cos(X))
    return P


def _pe_dropout_kernel(seed_ref, x_ref, p_ref, o_ref, *, dropout_p: float, n_rows: int):
    # x_ref / o_ref: (TR, C) blocks (batch dim squeezed), p_ref: (TR, C) block.
    # Compute in the native input dtype (bf16-native on v6e/v7x; no forced f32 upcast).
    y = x_ref[...] + p_ref[...]

    if dropout_p > 0.0:
        tr, c = y.shape
        # Grid is (row_blocks, batch): axis 0 = row block, axis 1 = batch.
        rblk = pl.program_id(0).astype(jnp.uint32)
        b = pl.program_id(1).astype(jnp.uint32)
        seed = seed_ref[0].astype(jnp.uint32)

        # Scalar base = seed mix + offset of this tile's first element in the (B, R, C)
        # array.  All scalar math stays on the scalar unit; the vector path below is just
        # iota + add + one mix round + compare.
        base = seed * jnp.uint32(0x9E3779B9) + (
            b * jnp.uint32(n_rows) + rblk * jnp.uint32(tr)
        ) * jnp.uint32(c)

        row = lax.broadcasted_iota(jnp.int32, (tr, c), 0)
        col = lax.broadcasted_iota(jnp.int32, (tr, c), 1)
        flat = (row * c + col).astype(jnp.uint32)          # unique in-tile element index

        # Thinned splitmix32-style finalizer (one multiply round) on (base + flat).
        # NOTE: counter space wraps at 2^32 elements; fine for realistic sizes.
        h = base + flat
        h = (h ^ (h >> jnp.uint32(16))) * jnp.uint32(0x7FEB352D)
        h = h ^ (h >> jnp.uint32(15))

        # Keep with prob (1 - p): single unsigned threshold compare on the raw bits.
        thresh = jnp.uint32(min(int(round(dropout_p * 2.0**32)), 0xFFFFFFFF))
        keep = h >= thresh
        scale = jnp.asarray(1.0 / (1.0 - dropout_p), dtype=y.dtype)
        y = jnp.where(keep, y * scale, jnp.zeros((), dtype=y.dtype))

    o_ref[...] = y.astype(o_ref.dtype)


def _row_align(itemsize: int) -> int:
    # Sub-32-bit dtypes pack rows per sublane; keep row tiles aligned to the packing.
    return {4: 8, 2: 16, 1: 32}.get(itemsize, 8)


def _device_tile_config():
    """(row-tile byte budget, vmem_limit_bytes or None) chosen per TPU generation."""
    try:
        kind = jax.devices()[0].device_kind.lower()
    except Exception:
        kind = ""
    if "v7" in kind:
        return 4 * 1024 * 1024, 48 * 1024 * 1024     # 64 MiB physical VMEM per TC
    if "v6" in kind:
        return 8 * 1024 * 1024, 64 * 1024 * 1024     # 128 MiB physical VMEM
    if "v5 lite" in kind or "v5lite" in kind or "v5e" in kind:
        return 2 * 1024 * 1024, 32 * 1024 * 1024     # deeply HBM-bound; keep tiles modest
    return 2 * 1024 * 1024, None                     # unknown: stay under default scoped VMEM


def _pick_row_tile(n_rows: int, n_cols: int, itemsize: int,
                   tile_budget_bytes: int, min_row_blocks: int = 1) -> int:
    """Row tile (aligned to dtype packing) so ~6 live tiles stay well under VMEM."""
    align = _row_align(itemsize)
    if n_rows <= align:
        return n_rows
    max_rows = max(align, tile_budget_bytes // max(n_cols * itemsize, 1))
    tr = min(n_rows, max_rows)
    tr = max(align, (tr // align) * align)
    # Keep at least `min_row_blocks` row blocks so v7x's two TensorCores both get work.
    while min_row_blocks > 1 and pl.cdiv(n_rows, tr) < min_row_blocks and tr > align:
        tr = max(align, ((tr // 2) // align) * align)
    return tr


def positional_encoding_forward(x, P, seed: int, dropout_p: float = DROPOUT_P):
    """x: (B, L, H). P: (max_len, H). Returns dropout(x + P[:L]) (inverted dropout)."""
    assert 0.0 <= dropout_p < 1.0
    B, L, H = x.shape
    p_slice = P[:L, :].astype(x.dtype)                                      # (L, H)

    # Present a lane-dense (rows, 128*k) view: reshape when possible, else zero-pad H.
    total = L * H
    pad_cols = 0
    if H % _LANE == 0:
        R, C = L, H
        x2, p2 = x, p_slice
    elif total % _LANE == 0:
        R, C = total // _LANE, _LANE
        x2 = x.reshape(B, R, C)
        p2 = p_slice.reshape(R, C)
    else:
        # Pad H to the next multiple of 128 so every store is a full-width vst; slice after.
        Hp = ((H + _LANE - 1) // _LANE) * _LANE
        pad_cols = Hp - H
        x2 = jnp.pad(x, ((0, 0), (0, 0), (0, pad_cols)))
        p2 = jnp.pad(p_slice, ((0, 0), (0, pad_cols)))
        R, C = L, Hp

    itemsize = jnp.dtype(x.dtype).itemsize
    tile_budget, vmem_limit = _device_tile_config()
    min_row_blocks = 2 if B == 1 else 1
    tr = _pick_row_tile(R, C, itemsize, tile_budget, min_row_blocks)

    # Grid order (row_blocks, B): P's block index is constant across the inner batch axis,
    # so the pipeline fetches each P tile from HBM exactly once (no per-batch re-stream).
    grid = (pl.cdiv(R, tr), B)

    seed_arr = jnp.array([seed], dtype=jnp.int32)
    kernel = functools.partial(_pe_dropout_kernel, dropout_p=float(dropout_p), n_rows=R)

    cp_kwargs = dict(dimension_semantics=("parallel", "parallel"))
    if vmem_limit is not None:
        cp_kwargs["vmem_limit_bytes"] = vmem_limit

    out = pl.pallas_call(
        kernel,
        out_shape=jax.ShapeDtypeStruct((B, R, C), x.dtype),
        grid_spec=pltpu.PrefetchScalarGridSpec(
            num_scalar_prefetch=1,                      # seed lands in SMEM
            grid=grid,
            in_specs=[
                pl.BlockSpec((None, tr, C), lambda r, b, seed: (b, r, 0)),  # X tile
                pl.BlockSpec((tr, C), lambda r, b, seed: (r, 0)),           # P tile (reused)
            ],
            out_specs=pl.BlockSpec((None, tr, C), lambda r, b, seed: (b, r, 0)),
        ),
        compiler_params=pltpu.CompilerParams(**cp_kwargs),
    )(seed_arr, x2, p2)

    if pad_cols:
        return out[:, :, :H]
    return out.reshape(B, L, H)


if __name__ == "__main__":
    num_hiddens = 32
    max_len = 16
    B, L = 2, 8

    key = jax.random.PRNGKey(0)
    x = jax.random.normal(key, (B, L, num_hiddens), dtype=jnp.float32)

    P = make_positional_encoding(max_len, num_hiddens)

    # Training mode (dropout applied).
    out = positional_encoding_forward(x, P, seed=0, dropout_p=DROPOUT_P)
    out = jax.block_until_ready(out)

    ref = x + P[None, :L, :]
    scaled = ref / (1.0 - DROPOUT_P)
    kept = out != 0.0
    ok = jnp.where(kept, jnp.abs(out - scaled) < 1e-4, jnp.abs(out) == 0.0)
    assert out.shape == (B, L, num_hiddens)
    assert bool(jnp.all(ok))

    # Eval mode (dropout_p=0 -> pure add).
    out_eval = positional_encoding_forward(x, P, seed=0, dropout_p=0.0)
    out_eval = jax.block_until_ready(out_eval)
    assert bool(jnp.all(jnp.abs(out_eval - ref) < 1e-5))

    print("KERNEL_OK")
</pallas_src>

<mosaic_0001>
module attributes {stable_mosaic.version = 11 : i64} {
  func.func @_pe_dropout_kernel(%arg0: i32, %arg1: i32, %arg2: memref<1xi32, #tpu.memory_space<smem>>, %arg3: memref<1x2x128xf32, #tpu.memory_space<vmem>>, %arg4: memref<2x128xf32, #tpu.memory_space<vmem>>, %arg5: memref<1x2x128xf32, #tpu.memory_space<vmem>>) attributes {dimension_semantics = [#tpu.dimension_semantics<parallel>, #tpu.dimension_semantics<parallel>], iteration_bounds = array<i64: 1, 2>, scalar_prefetch = 1 : i64, scratch_operands = 0 : i64, tpu.core_type = #tpu.core_type<tc>, window_params = [{transform_indices = @transform_0, window_bounds = array<i64: 1, 2, 128>}, {transform_indices = @transform_1, window_bounds = array<i64: 2, 128>}, {transform_indices = @transform_2, window_bounds = array<i64: 1, 2, 128>}]} {
    %c0 = arith.constant 0 : index
    %c0_0 = arith.constant 0 : index
    %c0_1 = arith.constant 0 : index
    %0 = vector.load %arg3[%c0, %c0_0, %c0_1] : memref<1x2x128xf32, #tpu.memory_space<vmem>>, vector<1x2x128xf32>
    %1 = vector.shape_cast %0 : vector<1x2x128xf32> to vector<2x128xf32>
    %c0_2 = arith.constant 0 : index
    %c0_3 = arith.constant 0 : index
    %2 = vector.load %arg4[%c0_2, %c0_3] : memref<2x128xf32, #tpu.memory_space<vmem>>, vector<2x128xf32>
    %3 = arith.addf %1, %2 : vector<2x128xf32>
    %c0_4 = arith.constant 0 : index
    %4 = memref.load %arg2[%c0_4] : memref<1xi32, #tpu.memory_space<smem>>
    %c-1640531527_i32 = arith.constant -1640531527 : i32
    %5 = arith.muli %4, %c-1640531527_i32 : i32
    %c2_i32 = arith.constant 2 : i32
    %6 = arith.muli %arg1, %c2_i32 : i32
    %c2_i32_5 = arith.constant 2 : i32
    %7 = arith.muli %arg0, %c2_i32_5 : i32
    %8 = arith.addi %6, %7 : i32
    %c128_i32 = arith.constant 128 : i32
    %9 = arith.muli %8, %c128_i32 : i32
    %10 = arith.addi %5, %9 : i32
    %11 = tpu.iota {dimensions = array<i32: 0>} : vector<2x128xi32>
    %12 = tpu.iota {dimensions = array<i32: 1>} : vector<2x128xi32>
    %c128_i32_6 = arith.constant 128 : i32
    %13 = vector.broadcast %c128_i32_6 : i32 to vector<2x128xi32>
    %14 = arith.muli %11, %13 : vector<2x128xi32>
    %15 = arith.addi %14, %12 : vector<2x128xi32>
    %16 = vector.broadcast %10 : i32 to vector<2x128xi32>
    %17 = arith.addi %16, %15 : vector<2x128xi32>
    %c16_i32 = arith.constant 16 : i32
    %18 = vector.broadcast %c16_i32 : i32 to vector<2x128xi32>
    %19 = arith.shrui %17, %18 : vector<2x128xi32>
    %20 = arith.xori %17, %19 : vector<2x128xi32>
    %c2146121005_i32 = arith.constant 2146121005 : i32
    %21 = vector.broadcast %c2146121005_i32 : i32 to vector<2x128xi32>
    %22 = arith.muli %20, %21 : vector<2x128xi32>
    %c15_i32 = arith.constant 15 : i32
    %23 = vector.broadcast %c15_i32 : i32 to vector<2x128xi32>
    %24 = arith.shrui %22, %23 : vector<2x128xi32>
    %25 = arith.xori %22, %24 : vector<2x128xi32>
    %c429496730_i32 = arith.constant 429496730 : i32
    %26 = vector.broadcast %c429496730_i32 : i32 to vector<2x128xi32>
    %27 = arith.cmpi uge, %25, %26 : vector<2x128xi32>
    %cst = arith.constant 1.11111116 : f32
    %28 = vector.broadcast %cst : f32 to vector<2x128xf32>
    %29 = arith.mulf %3, %28 : vector<2x128xf32>
    %cst_7 = arith.constant 0.000000e+00 : f32
    %30 = vector.broadcast %cst_7 : f32 to vector<2x128xf32>
    %31 = arith.select %27, %29, %30 : vector<2x128xi1>, vector<2x128xf32>
    %c0_8 = arith.constant 0 : index
    %c0_9 = arith.constant 0 : index
    %c0_10 = arith.constant 0 : index
    %32 = vector.load %arg5[%c0_8, %c0_9, %c0_10] : memref<1x2x128xf32, #tpu.memory_space<vmem>>, vector<1x2x128xf32>
    %33 = vector.shape_cast %32 : vector<1x2x128xf32> to vector<2x128xf32>
    %34 = vector.shape_cast %31 : vector<2x128xf32> to vector<1x2x128xf32>
    tpu.vector_store %arg5[%c0_8, %c0_9, %c0_10], %34 {strides = array<i32>} : memref<1x2x128xf32, #tpu.memory_space<vmem>>, vector<1x2x128xf32>,
    return
  }
  func.func @transform_0(%arg0: i32, %arg1: i32, %arg2: memref<1xi32, #tpu.memory_space<smem>>) -> (i32, i32, i32) {
    %c0_i32 = arith.constant 0 : i32
    %c0_i32_0 = arith.constant 0 : i32
    return %arg1, %arg0, %c0_i32 : i32, i32, i32
  }
  func.func @transform_1(%arg0: i32, %arg1: i32, %arg2: memref<1xi32, #tpu.memory_space<smem>>) -> (i32, i32) {
    %c0_i32 = arith.constant 0 : i32
    %c0_i32_0 = arith.constant 0 : i32
    return %arg0, %c0_i32 : i32, i32
  }
  func.func @transform_2(%arg0: i32, %arg1: i32, %arg2: memref<1xi32, #tpu.memory_space<smem>>) -> (i32, i32, i32) {
    %c0_i32 = arith.constant 0 : i32
    %c0_i32_0 = arith.constant 0 : i32
    return %arg1, %arg0, %c0_i32 : i32, i32, i32
  }
}

</mosaic_0001>

<bundles_post_ra>
// kernel: tpu_custom_call.1
= control target key start
LH: loop header
LB: loop body
LE: loop exit
PB: predicated region body
PF: predicated region fallthrough
CT: control target
= control target key end

     0   :  { %s726_s0 = inlined_call_operand.<no memory space> [shape: s32[1], index: 0, kind: input, shape index: {}]   ;;  %s727_s1 = inlined_call_operand.hbm [shape: f32[2,2,128], index: 1, kind: input, shape index: {}]   ;;  %s728_s2 = inlined_call_operand.vmem [shape: f32[2,128], index: 2, kind: input, shape index: {}]   ;;  %s729_s3 = inlined_call_operand.hbm [shape: f32[2,2,128], index: 3, kind: output, shape index: {}]  }
   0x1   :  { %8 = sst [smem:[#allocation3]] %s726_s0 }
   0x2   :  { %9 = vsyncpa [#allocation5], 0 }
   0x3   :  { %11 = vsyncpa [#allocation5 + $0x1], 0 }
   0x4   :  { %12 = vsyncpa [#allocation6], 0 }
   0x5   :  { %14 = vsyncpa [#allocation6 + $0x1], 0  ;;  %s550_s14 = smov 0   ;;  %s552_s15 = smov 0  }
   0x6   :  { %s554_s16 = smov 0   ;;  %s556_s17 = smov 0  }
   0x7   :  { %s558_s18 = smov 0   ;;  %s560_s19 = smov 0  }
   0x8 LB: > { %s332_s0 = sadd.s32 4294967295, %s523_s19   ;;  %s333_s20 = sadd.s32 4294967294, %s523_s19   ;;  %s523_s19 = sphi %s560_s19, %s20_s19   ;;  %s519_s18 = sphi %s558_s18, %s745_s18   ;;  %s515_s17 = sphi %s556_s17, %s744_s17   ;;  %s511_s16 = sphi %s554_s16, %s743_s16   ;;  %s507_s15 = sphi %s552_s15, %s742_s15   ;;  %s503_s14 = sphi %s550_s14, %s741_s14  }
   0x9   : > { %s29_s21 = sadd.s32 1, %s519_s18  ;;  %s41_s22 = sadd.s32 1, %s511_s16 }
   0xa   : > { %p30_p0 = scmp.ge.s32.totalorder %s29_s21, 2  ;;  %p48_p1 = scmp.ne.s32.totalorder %s511_s16, %s507_s15 }
   0xb   : > { %p49_p2 = scmp.eq.s32.totalorder %s523_s19, 0  ;;  %p54_p3 = scmp.ne.s32.totalorder %s507_s15, %s503_s14 }
   0xc   : > { %s747_s21 = smov (%p30_p0, %s29_s21), 0  ;;  %p55_p5 = scmp.eq.s32.totalorder %s332_s0, 0 }
   0xd   : > { %p591_p4 = por %p49_p2, %p48_p1  ;;  %s36_s24 = ssub.s32 %s519_s18, %s747_s21 }
   0xe   : > { %p106_p6 = scmp.eq.s32.totalorder %s332_s0, 1  ;;  %p39_p7 = scmp.eq.s32.totalorder %s36_s24, 0 }
   0xf   : > { %p597_p8 = por %p55_p5, %p54_p3  ;;  %p112_p10 = scmp.eq.s32.totalorder %s333_s20, 1 }
  0x10   : > { %p601_p9 = por %p106_p6, %p48_p1  ;;  %p361_p13 = scmp.lt.s32.totalorder %s523_s19, 2 }
  0x11   : > { %s606_s27 = scalar_select %p39_p7, %s511_s16, %s41_s22  }
  0x12   : > { %s733_s26 = scalar_select %p601_p9, 1, 0 }
  0x13   : > { %p608_p11 = por %p112_p10, %p54_p3  ;;  %s139_s29 = sand.u32 1, %s511_s16  }
  0x14   : > { %s337_s30 = sshll.u32 %s139_s29, 1  ;;  %s338_s4 = sshll.u32 %s519_s18, 5 }
  0x15   : > { %s734_s28 = scalar_select %p608_p11, 1, 0 }
  0x16   : > { %s619_s7 = scalar_lea.hbm %s727_s1, %s338_s4  ;;  %s143_s8 = scalar_lea.vmem [#allocation4], %s337_s30 }
  0x17   : > { %s151_s9 = sshll.u32 %s143_s8, 4  ;;  %p625_p0 = pnand %p361_p13, %p591_p4  ;;  %s621_s9 = int_to_ptr.vmem [resolvable:$true] %s151_s9 }
  0x18   : > { %s140_s11 = scalar_lea.sflag [#allocation5], %s139_s29  ;;  %s411_s12 = scalar_lea.hbm %s619_s7, 32 }
  0x19   : > { %p412_p3 = scmp.ne.s32.totalorder %s619_s7, %s411_s12  ;;  %p413_p5 = pneg %p625_p0 }
  0x1a   : > { %s416_s20 = scalar_lea.hbm %s727_s1, 64  ;;  %p417_p4 = scmp.lt.u32.totalorder %s619_s7, %s727_s1 }
  0x1b   : > { %p414_p6 = pnand %p413_p5, %p412_p3  ;;  %p418_p10 = scmp.lt.u32.totalorder %s416_s20, %s411_s12 }
  0x1c   : > { %p420_p12 = scmp.lt.u32.totalorder %s411_s12, %s619_s7 }
  0x1d   : > { %p415_p7 = pneg %p414_p6  ;;  %p419_p13 = por %p418_p10, %p417_p4 }
  0x1f   : > { %p421_p1 = por %p420_p12, %p419_p13 }
  0x21   : > { %p422_p2 = pnand %p421_p1, %p415_p7 }
  0x23   : > { %425 = shalt.err (!%p422_p2)
}
  0x24   : > { %s426_s24 = scalar_lea.vmem %s621_s9, 32  ;;  %s525_s29 = smov [#allocation4]  }
  0x25   : > { %p427_p3 = scmp.ne.s32.totalorder %s621_s9, %s426_s24  ;;  %s431_s30 = sshll.u32 %s525_s29, 4  ;;  %s432_s30 = int_to_ptr.vmem [resolvable:$false] %s431_s30 }
  0x26   : > { %s433_s4 = scalar_lea.vmem %s432_s30, 64  ;;  %p434_p9 = scmp.lt.s32.totalorder %s621_s9, %s432_s30 }
  0x27   : > { %p429_p6 = pnand %p427_p3, %p413_p5  ;;  %p435_p4 = scmp.lt.s32.totalorder %s433_s4, %s426_s24 }
  0x29   : > { %p430_p11 = pneg %p429_p6  ;;  %p436_p10 = por %p435_p4, %p434_p9 }
  0x2b   : > { %p437_p12 = pnand %p436_p10, %p430_p11 }
  0x2d   : > { %440 = shalt.err (!%p437_p12)
}
  0x2e   : > { %356 = dma.hbm_to_vmem [thread:$0]  (!%p625_p0), %s619_s7, 32, %s621_s9, %s140_s11  }
  0x2f   : > { %p736_p1 = scmp.lt.s32.totalorder %s523_s19, 3  ;;  %p737_p2 = scmp.ge.s32.totalorder %s523_s19, 1 }
  0x31   : > { %p157_p5 = pnand %p737_p2, %p736_p1 }
  0x32   : > { %s661_s5 = sand.u32 (!%p157_p5), 1, %s507_s15  }
  0x33   : > { %160 = sbr.rel (%p157_p5) target bundleno = 97 (0x61), region = 28  ;;  %s340_s6 = sshll.u32 (!%p157_p5), %s661_s5, 1 }
  0x34   : > { %s163_s8 = scalar_lea.sflag (!%p157_p5), [#allocation5], %s661_s5  ;;  %s166_s12 = scalar_lea.vmem (!%p157_p5), [#allocation4], %s340_s6 }
  0x3a   : > { %494 = dma.done.wait (%p597_p8), %s163_s8, 32  }
  0x3b   : > { %496 = vsyncadd (%p597_p8), %s163_s8, 4294967264  ;;  %v205_v0 = vlaneseq  ;;  %s198_s7 = sld [smem:[#allocation3]]  ;;  %s348_s9 = sshll.u32 %s515_s17, 8  ;;  %v195_v7 = vld [vmem:[%s166_s12] sm:$0x3] }
  0x3c   : > { %v196_v8 = vld [vmem:[%s728_s2] sm:$0x3]  ;;  %s190_s25 = scalar_lea.vmem [#allocation7], %s340_s6  ;;  %s345_s22 = sshll.u32 %s515_s17, 5 }
  0x3d   : > { %v206_v1 = vshrl.u32 %v205_v0, 7  ;;  %v208_v2 = vand.u32 127, %v205_v0  ;;  %v197_v11 = vadd.f32 %v196_v8, %v195_v7  ;;  %s237_s20 = sshll.u32 %s190_s25, 4  ;;  %s679_s29 = scalar_lea.hbm %s729_s3, %s345_s22  ;;  %s674_s20 = int_to_ptr.vmem [resolvable:$true] %s237_s20 }
  0x3e   : > { %s223_s30 = scalar_lea.sflag [#allocation6], %s661_s5  ;;  %s441_s4 = scalar_lea.vmem %s674_s20, 32 }
  0x3f   : > { %v209_v3 = vmul.u32 128, %v206_v1  ;;  %v219_v14 = vmul.f32 1.1111112, %v197_v11  ;;  %p442_p8 = scmp.ne.s32.totalorder %s674_s20, %s441_s4  ;;  %p738_p9 = scmp.ne.s32.totalorder %s733_s26, 0 }
  0x40   : > { %s526_s17 = smov [#allocation7]  }
  0x41   : > { %s199_s10 = smul.u32 2654435769, %s198_s7  ;;  %v210_v4 = vadd.s32 %v209_v3, %v208_v2  ;;  %p443_p11 = pnand %p442_p8, %p738_p9 }
  0x42   : > { %s445_s6 = sshll.u32 %s526_s17, 4  ;;  %s446_s6 = int_to_ptr.vmem [resolvable:$false] %s445_s6 }
  0x43   : > { %s204_s11 = sadd.s32 %s348_s9, %s199_s10  ;;  %p444_p0 = pneg %p443_p11 }
  0x44   : > { %v211_v5 = vstv %s204_s11  ;;  %s447_s8 = scalar_lea.vmem %s446_s6, 64  ;;  %p448_p7 = scmp.lt.s32.totalorder %s674_s20, %s446_s6 }
  0x45   : > { %v212_v6 = vadd.s32 %v211_v5, %v210_v4  ;;  %p449_p13 = scmp.lt.s32.totalorder %s447_s8, %s441_s4 }
  0x47   : > { %v213_v9 = vshrl.u32 %v212_v6, 16  ;;  %p450_p3 = por %p449_p13, %p448_p7 }
  0x49   : > { %v214_v10 = vxor.u32 %v213_v9, %v212_v6  ;;  %p451_p6 = pnand %p450_p3, %p444_p0 }
  0x4b   : > { %v215_v12 = vmul.u32 2146121005, %v214_v10 }
  0x4d   : > { %v216_v13 = vshrl.u32 %v215_v12, 15 }
  0x4f   : > { %v217_v15 = vxor.u32 %v216_v13, %v215_v12 }
  0x51   : > { %vm218_vm0 = vcmp.ge.u32.totalorder %v217_v15, 429496730 }
  0x52   : > { %v220_v16 = vsel %vm218_vm0, %v219_v14, 0.0 }
  0x53   : > { %221 = vst [vmem:[%s190_s25] sm:$0x3] %v220_v16 }
  0x54   : > { %454 = shalt.err (!%p451_p6)
}
  0x55   : > { %s455_s5 = scalar_lea.hbm %s679_s29, 32  ;;  %s459_s9 = scalar_lea.hbm %s729_s3, 64 }
  0x56   : > { %p456_p4 = scmp.ne.s32.totalorder %s679_s29, %s455_s5  ;;  %p460_p1 = scmp.lt.u32.totalorder %s679_s29, %s729_s3 }
  0x57   : > { %p461_p2 = scmp.lt.u32.totalorder %s459_s9, %s455_s5  ;;  %p463_p8 = scmp.lt.u32.totalorder %s455_s5, %s679_s29 }
  0x58   : > { %p457_p10 = pnand %p456_p4, %p738_p9 }
  0x59   : > { %p462_p5 = por %p461_p2, %p460_p1 }
  0x5a   : > { %p458_p12 = pneg %p457_p10 }
  0x5b   : > { %p464_p11 = por %p463_p8, %p462_p5 }
  0x5d   : > { %p465_p0 = pnand %p464_p11, %p458_p12 }
  0x5f   : > { %468 = shalt.err (!%p465_p0)
}
  0x60   : > { %351 = dma.vmem_to_hbm [thread:$0]  (%p738_p9), %s674_s20, 32, %s679_s29, %s223_s30  }
  0x61 PF: > { %s249_s13 = sand.u32 1, %s503_s14   ;;  %p739_p7 = scmp.ne.s32.totalorder %s734_s28, 0 }
  0x62   : > { %p740_p13 = scmp.ge.s32.totalorder %s523_s19, 2  ;;  %s250_s0 = scalar_lea.sflag [#allocation6], %s249_s13 }
  0x64   : > { %p358_p3 = pnand %p740_p13, %p739_p7 }
  0x66   : > { %498 = dma.done.wait (!%p358_p3), %s250_s0, 32  }
  0x67   : > { %500 = vsyncadd (!%p358_p3), %s250_s0, 4294967264  ;;  %s20_s19 = sadd.s32 1, %s523_s19   ;;  %s741_s14 = smov %s507_s15 }
  0x68   : > { %p17_p6 = scmp.ge.s32.totalorder %s20_s19, 4   ;;  %s742_s15 = smov %s511_s16 }
  0x69   : > { %s743_s16 = smov %s606_s27  ;;  %s744_s17 = smov %s519_s18 }
  0x6a   : > { %s745_s18 = smov %s747_s21  ;;  %19 = sbr.rel (!%p17_p6) target bundleno = 8 (0x8), region = 76 }
  0x71   :  { %255 = vsyncpa [#allocation5], 1 }
  0x72   :  { %257 = vsyncpa [#allocation5 + $0x1], 1 }
  0x73   :  { %258 = vsyncpa [#allocation6], 1 }
  0x74   :  { %260 = vsyncpa [#allocation6 + $0x1], 1 }

</bundles_post_ra>
